<compile_context>
chip_gen: v6e
topology: v6e:2x2x1
jax: 0.10.0
libtpu: 0.0.40
codegen_flags: <defaults>
</compile_context>

<pallas_src>
import functools
import math

import jax
import jax.numpy as jnp
from jax.experimental import pallas as pl
from jax.experimental.pallas import tpu as pltpu


def _box_embed_kernel(x_ref, w_ref, b_ref, o_ref):
    # x_ref: [TM, P*4]  w_ref: [P*4, P*H]  b_ref: [1, P*H]  o_ref: [TM, P*H]
    acc = jnp.dot(
        x_ref[...],
        w_ref[...],
        preferred_element_type=jnp.float32,
        precision=jax.lax.Precision.HIGHEST,
    )
    acc = acc + b_ref[...]                      # broadcast [1, P*H] over rows
    o_ref[...] = jnp.maximum(acc, 0.0).astype(o_ref.dtype)


def _vmem_budgets():
    """Return (double-buffered x+out byte budget, vmem_limit_bytes), gated per chip."""
    cap = None
    try:
        cap = getattr(pltpu.get_tpu_info(), "vmem_capacity_bytes", None)
    except Exception:
        cap = None
    if cap is not None and cap >= 96 * 1024 * 1024:
        # v5e / v6e: 128 MiB physical VMEM -> big tiles, 64 MiB scoped limit.
        return 48 * 1024 * 1024, 64 * 1024 * 1024
    # v7x (64 MiB physical) or unknown backend: stay conservative.
    return 28 * 1024 * 1024, 40 * 1024 * 1024


@functools.partial(jax.jit, static_argnames=("tile_m",))
def iddp_feature_extractor(x, w, b, *, tile_m=None):
    """ReLU(x @ w + b) over the last dim of x.

    x: float32[..., 4], w: float32[4, H] (transposed PyTorch layout), b: float32[H]
    returns float32[..., H]
    """
    in_dim = x.shape[-1]
    hidden = w.shape[-1]
    lead_shape = x.shape[:-1]
    n_rows = 1
    for d in lead_shape:
        n_rows *= d

    # --- row packing so the output last dim is a lane-dense multiple of 128 ---
    # Smallest pack making hidden*pack a multiple of 128; keep pack small so the
    # block-diagonal MXU waste stays negligible versus the HBM store stream.
    pack = 128 // math.gcd(hidden, 128)
    if pack > 8 or hidden * pack > 512:
        pack = 1  # unpacked fallback (masked stores) only for awkward hidden sizes

    # Pad only the <pack tail rows (instead of dropping the whole tensor to the
    # masked-store pack=1 path when n_rows isn't a multiple of pack).
    pad_rows = (-n_rows) % pack
    x_flat = x.reshape(n_rows, in_dim)
    if pad_rows:
        x_flat = jnp.pad(x_flat, ((0, pad_rows), (0, 0)))
    n_total = n_rows + pad_rows
    n_packed = n_total // pack
    packed_in = in_dim * pack
    packed_out = hidden * pack

    # Row-major-compatible reshape: free (no data movement).
    x2d = x_flat.reshape(n_packed, packed_in)

    if pack > 1:
        # Block-diagonal weight: packed-out col-block g = packed-in row-block g @ W.
        w_k = jnp.kron(jnp.eye(pack, dtype=w.dtype), w)       # [P*4, P*H]
        b_k = jnp.tile(b, pack)                                # [P*H]
    else:
        w_k = w
        b_k = b
    b2d = b_k.reshape(1, packed_out)

    # --- tile sizing straight from the per-generation VMEM budget ---
    budget, vmem_limit = _vmem_budgets()
    bytes_per_packed_row = 2 * 4 * (max(packed_in, 128) + packed_out)  # dbl-buffered
    auto_rows = max(8, budget // bytes_per_packed_row)
    tile_rows = auto_rows if tile_m is None else max(8, min(tile_m, auto_rows))
    tile_rows = min(tile_rows, 32768)
    tile_rows = (tile_rows // 8) * 8
    if tile_rows >= n_packed:
        tile_rows = n_packed                     # full extent: always a legal block

    grid = (pl.cdiv(n_packed, tile_rows),)       # ragged last block is masked

    cost = pl.CostEstimate(
        flops=2 * n_rows * in_dim * hidden,
        transcendentals=0,
        bytes_accessed=4 * (x2d.size + n_packed * packed_out + w_k.size + packed_out),
    )

    out = pl.pallas_call(
        _box_embed_kernel,
        out_shape=jax.ShapeDtypeStruct((n_packed, packed_out), x.dtype),
        grid_spec=pltpu.PrefetchScalarGridSpec(
            num_scalar_prefetch=0,
            grid=grid,
            in_specs=[
                pl.BlockSpec((tile_rows, packed_in), lambda i: (i, 0)),
                pl.BlockSpec((packed_in, packed_out), lambda i: (0, 0)),
                pl.BlockSpec((1, packed_out), lambda i: (0, 0)),
            ],
            out_specs=pl.BlockSpec((tile_rows, packed_out), lambda i: (i, 0)),
        ),
        compiler_params=pltpu.CompilerParams(
            dimension_semantics=("parallel",),    # megacore sharding on multi-TC parts
            vmem_limit_bytes=vmem_limit,
        ),
        cost_estimate=cost,
    )(x2d, w_k, b2d)

    # Free row-major reshape back to row-major rows; drop padded tail if any.
    out = out.reshape(n_total, hidden)
    if pad_rows:
        out = out[:n_rows]
    return out.reshape(*lead_shape, hidden)


def init_params(key, hidden_size):
    """Deterministic init mirroring nn.Linear(4, hidden_size) parameter shapes."""
    k_w, k_b = jax.random.split(key)
    in_dim = 4
    bound = 1.0 / jnp.sqrt(in_dim)
    # PyTorch stores weight as [hidden, 4]; we keep the transposed [4, hidden]
    # layout so the kernel does x @ W directly.
    w = jax.random.uniform(k_w, (in_dim, hidden_size), jnp.float32, -bound, bound)
    b = jax.random.uniform(k_b, (hidden_size,), jnp.float32, -bound, bound)
    return w, b


def _ref(x, w, b):
    return jnp.maximum(jnp.einsum("...i,ih->...h", x, w) + b, 0.0)


if __name__ == "__main__":
    key = jax.random.PRNGKey(0)
    k_x, k_p, k_x2, k_x3 = jax.random.split(key, 4)

    # Small shapes consistent with the module: (batch, seq, 4) bbox inputs.
    batch, seq, hidden = 2, 8, 32
    x = jax.random.normal(k_x, (batch, seq, 4), jnp.float32)
    w, b = init_params(k_p, hidden)

    out = jax.block_until_ready(iddp_feature_extractor(x, w, b))
    ref = _ref(x, w, b)
    assert out.shape == (batch, seq, hidden)
    assert jnp.allclose(out, ref, atol=1e-5, rtol=1e-5)

    # Packed + multi-step grid with a ragged last packed block
    # (9000 rows -> 2250 packed rows; tile_m=512 -> grid of 5, masked tail).
    x2 = jax.random.normal(k_x2, (3, 3000, 4), jnp.float32)
    out2 = jax.block_until_ready(iddp_feature_extractor(x2, w, b, tile_m=512))
    ref2 = _ref(x2, w, b)
    assert out2.shape == (3, 3000, hidden)
    assert jnp.allclose(out2, ref2, atol=1e-5, rtol=1e-5)

    # Row count not a multiple of pack (35 rows, pack=4): tail-pad path,
    # still lane-dense stores for the bulk.
    x3 = jax.random.normal(k_x3, (5, 7, 4), jnp.float32)
    out3 = jax.block_until_ready(iddp_feature_extractor(x3, w, b))
    ref3 = _ref(x3, w, b)
    assert out3.shape == (5, 7, hidden)
    assert jnp.allclose(out3, ref3, atol=1e-5, rtol=1e-5)

    print("KERNEL_OK")
</pallas_src>

<mosaic_0001>
module attributes {stable_mosaic.version = 11 : i64} {
  func.func @_box_embed_kernel(%arg0: i32, %arg1: memref<4x16xf32, #tpu.memory_space<vmem>>, %arg2: memref<16x128xf32, #tpu.memory_space<vmem>>, %arg3: memref<1x128xf32, #tpu.memory_space<vmem>>, %arg4: memref<4x128xf32, #tpu.memory_space<vmem>>) attributes {dimension_semantics = [#tpu.dimension_semantics<parallel>], iteration_bounds = array<i64: 1>, scalar_prefetch = 0 : i64, scratch_operands = 0 : i64, tpu.core_type = #tpu.core_type<tc>, window_params = [{transform_indices = @transform_0, window_bounds = array<i64: 4, 16>}, {pipeline_mode = #tpu.pipeline_mode<synchronous>, transform_indices = @transform_1, window_bounds = array<i64: 16, 128>}, {pipeline_mode = #tpu.pipeline_mode<synchronous>, transform_indices = @transform_2, window_bounds = array<i64: 1, 128>}, {transform_indices = @transform_3, window_bounds = array<i64: 4, 128>}]} {
    %c0 = arith.constant 0 : index
    %c0_0 = arith.constant 0 : index
    %0 = vector.load %arg1[%c0, %c0_0] : memref<4x16xf32, #tpu.memory_space<vmem>>, vector<4x16xf32>
    %c0_1 = arith.constant 0 : index
    %c0_2 = arith.constant 0 : index
    %1 = vector.load %arg2[%c0_1, %c0_2] : memref<16x128xf32, #tpu.memory_space<vmem>>, vector<16x128xf32>
    %cst = arith.constant dense<0.000000e+00> : vector<4x128xf32>
    %2 = tpu.matmul %0, %1, %cst {dimension_numbers = #tpu.dot_dimension_numbers<[1], [0], [0], [1], [0, 0, 1, 1], [], []>, precision = #tpu.contract_precision<fp32>} : vector<4x16xf32>, vector<16x128xf32>, vector<4x128xf32> -> vector<4x128xf32>
    %c0_3 = arith.constant 0 : index
    %c0_4 = arith.constant 0 : index
    %3 = vector.load %arg3[%c0_3, %c0_4] : memref<1x128xf32, #tpu.memory_space<vmem>>, vector<1x128xf32>
    %4 = vector.broadcast %3 : vector<1x128xf32> to vector<4x128xf32>
    %5 = arith.addf %2, %4 : vector<4x128xf32>
    %cst_5 = arith.constant 0.000000e+00 : f32
    %6 = vector.broadcast %cst_5 : f32 to vector<4x128xf32>
    %7 = arith.maximumf %5, %6 : vector<4x128xf32>
    %c0_6 = arith.constant 0 : index
    %c0_7 = arith.constant 0 : index
    %8 = vector.load %arg4[%c0_6, %c0_7] : memref<4x128xf32, #tpu.memory_space<vmem>>, vector<4x128xf32>
    tpu.vector_store %arg4[%c0_6, %c0_7], %7 {strides = array<i32>} : memref<4x128xf32, #tpu.memory_space<vmem>>, vector<4x128xf32>,
    return
  }
  func.func @transform_0(%arg0: i32) -> (i32, i32) {
    %c0_i32 = arith.constant 0 : i32
    %c0_i32_0 = arith.constant 0 : i32
    return %arg0, %c0_i32 : i32, i32
  }
  func.func @transform_1(%arg0: i32) -> (i32, i32) {
    %c0_i32 = arith.constant 0 : i32
    %c0_i32_0 = arith.constant 0 : i32
    %c0_i32_1 = arith.constant 0 : i32
    return %c0_i32, %c0_i32_0 : i32, i32
  }
  func.func @transform_2(%arg0: i32) -> (i32, i32) {
    %c0_i32 = arith.constant 0 : i32
    %c0_i32_0 = arith.constant 0 : i32
    %c0_i32_1 = arith.constant 0 : i32
    return %c0_i32, %c0_i32_0 : i32, i32
  }
  func.func @transform_3(%arg0: i32) -> (i32, i32) {
    %c0_i32 = arith.constant 0 : i32
    %c0_i32_0 = arith.constant 0 : i32
    return %arg0, %c0_i32 : i32, i32
  }
}

</mosaic_0001>

<bundles_post_ra>
// kernel: tile.9
= control target key start
LH: loop header
LB: loop body
LE: loop exit
PB: predicated region body
PF: predicated region fallthrough
CT: control target
= control target key end

     0   :  { %vm8_vm0 = vcmask 261120   ;;  %s40_s8 = smov 32   ;;  %s41_s9 = smov 64   ;;  %vm14_vm1 = vcmask 1048320   ;;  %vm20_vm2 = vcmask 785920   ;;  %vm26_vm3 = vcmask 523520   ;;  %s58_s0 = inlined_call_operand.vmem [shape: f32[4,32], index: 0, kind: input, shape index: {}]   ;;  %s59_s1 = inlined_call_operand.vmem [shape: f32[1,128], index: 1, kind: output, shape index: {}]  }
   0x1   :  { %v5_v0 = vld [vmem:[%s58_s0] sm:$0xf]  ;;  %s39_s0 = smov 96  }
   0x2   :  { %6 = vst [vmem:[#allocation1] sm:$0xf] %v5_v0 }
   0x9   :  { %v11_v1 = vld [vmem:[#allocation1 + $0x3] sm:$0x1]   ;;  %v23_v2 = vld [vmem:[#allocation1 + $0x1] sm:$0x1]   ;;  %v7_v3 = vld [vmem:[#allocation1] sm:$0x1]  }
   0xa   :  { %12 = vrot.lane.b32.xlu0 %v11_v1, %s39_s0  ;;  %24 = vrot.lane.b32.xlu1 %v23_v2, %s40_s8  ;;  %v17_v4 = vld [vmem:[#allocation1 + $0x2] sm:$0x1]   ;;  %9 = vst.msk [vmem:[#allocation0] sm:$0x1] %vm8_vm0, %v7_v3  }
   0xe   :  { %18 = vrot.lane.b32.xlu0 %v17_v4, %s41_s9 }
  0x7c   :  { %v13_v5 = vpop.permute.xlu0 %12   ;;  %v25_v6 = vpop.permute.xlu1 %24  }
  0x7d   :  { %15 = vst.msk [vmem:[#allocation0] sm:$0x1] %vm14_vm1, %v13_v5  }
  0x80   :  { %v19_v7 = vpop.permute.xlu0 %18  }
  0x81   :  { %21 = vst.msk [vmem:[#allocation0] sm:$0x1] %vm20_vm2, %v19_v7  }
  0x82   :  { %27 = vst.msk [vmem:[#allocation0] sm:$0x1] %vm26_vm3, %v25_v6  }
  0x89   :  { %v32_v8 = vld [vmem:[#allocation0] sm:$0x1] }
  0x8a   :  { %35 = vst [vmem:[%s59_s1] sm:$0x1] %v32_v8 }

// kernel: tile.8
= control target key start
LH: loop header
LB: loop body
LE: loop exit
PB: predicated region body
PF: predicated region fallthrough
CT: control target
= control target key end

     0   :  { %s22_s0 = inlined_call_operand.vmem [shape: f32[32], index: 0, kind: input, shape index: {}]   ;;  %s23_s1 = inlined_call_operand.vmem [shape: f32[4,32], index: 1, kind: output, shape index: {}]  }
   0x1   :  { %v4_v0 = vld [vmem:[%s22_s0] ss:$0 sm:$0xff] }
   0x2   :  { %5 = vst [vmem:[%s23_s1] sm:$0xf] %v4_v0 }

// kernel: iddp_feature_extractor.1
= control target key start
LH: loop header
LB: loop body
LE: loop exit
PB: predicated region body
PF: predicated region fallthrough
CT: control target
= control target key end

     0   :  { %vm24_vm0 = vcmask 130048   ;;  %v556_v0 = vmov 0.0   ;;  %vm557_vm1 = vmmov 0   ;;  %s599_s1 = inlined_call_operand.vmem [shape: f32[16,128], index: 1, kind: input, shape index: {}]   ;;  %s600_s0 = inlined_call_operand.vmem [shape: f32[4,16], index: 0, kind: input, shape index: {}]   ;;  %s601_s2 = inlined_call_operand.vmem [shape: f32[1,128], index: 2, kind: input, shape index: {}]   ;;  %s602_s3 = inlined_call_operand.vmem [shape: f32[4,128], index: 3, kind: output, shape index: {}]  }
   0x1   :  { %512 = vmatprep.subr.mxu0 %v556_v0  ;;  %v16_v1 = vld [vmem:[%s599_s1 + $0x8] sm:$0xff]  ;;  %519 = vmatprep.subr.mxu1 %v556_v0  ;;  %v15_v2 = vld [vmem:[%s599_s1] sm:$0xff] }
   0x2   :  { %v14_v3 = vld [vmem:[%s600_s0] sm:$0xf]  ;;  %v57_v4 = vand.u32 4294901760, %v16_v1  ;;  %v60_v5 = vand.u32 4294901760, %v15_v2  ;;  %516 = vmatprep.mubr.msk.f32.mxu0 %vm557_vm1, %v556_v0  ;;  %523 = vmatprep.mubr.msk.f32.mxu1 %vm557_vm1, %v556_v0 }
   0x3   :  { %v26_v6 = vsel %vm24_vm0, %v14_v3, 0  ;;  %v493_v20 = vld [vmem:[%s601_s2] ss:$0 sm:$0xff] }
   0x4   :  { %v95_v7 = vand.u32 4294901760, %v26_v6  ;;  %513 = vmatpush3.msra.mxu0 %v57_v4  ;;  %v135_v8 = vsub.f32 %v16_v1, %v57_v4  ;;  %v142_v9 = vsub.f32 %v15_v2, %v60_v5 }
   0x5   :  { %514 = vmatprep.subr.mxu0 %v556_v0 }
   0x6   :  { %v96_v10 = vsub.f32 %v26_v6, %v95_v7  ;;  %515 = vmatpush3.msra.mxu0 %v60_v5  ;;  %v136_v11 = vand.u32 4294901760, %v135_v8  ;;  %v143_v12 = vand.u32 4294901760, %v142_v9 }
   0x7   :  { %526 = vmatprep.subr.mxu0 %v556_v0 }
   0x8   :  { %v97_v13 = vand.u32 4294901760, %v96_v10  ;;  %v137_v14 = vsub.f32 %v135_v8, %v136_v11  ;;  %v144_v15 = vsub.f32 %v142_v9, %v143_v12 }
   0xa   :  { %v98_v16 = vsub.f32 %v96_v10, %v97_v13  ;;  %v138_v17 = vand.u32 4294901760, %v137_v14  ;;  %v145_v18 = vand.u32 4294901760, %v144_v15 }
   0xc   :  { %v99_v19 = vand.u32 4294901760, %v98_v16  ;;  %520 = vmatpush3.msra.mxu1 %v138_v17 }
   0xd   :  { %521 = vmatprep.subr.mxu1 %v556_v0 }
   0xe   :  { %517 = vmatmul.mubr.f32.vlgmr.msra.gmra.mxu0 %v99_v19  ;;  %522 = vmatpush3.msra.mxu1 %v145_v18 }
   0xf   :  { %527 = vmatpush3.msra.mxu0 %v135_v8  ;;  %524 = vmatmul.mubr.f32.vlgmr.msra.gmra.mxu1 %v95_v7 }
  0x10   :  { %528 = vmatprep.subr.mxu0 %v556_v0  ;;  %533 = vmatprep.subr.mxu1 %v556_v0 }
  0x11   :  { %529 = vmatpush3.msra.mxu0 %v142_v9  ;;  %530 = vmatprep.mubr.msk.f32.mxu0 %vm557_vm1, %v556_v0 }
  0x12   :  { %534 = vmatpush3.msra.mxu1 %v57_v4  ;;  %531 = vmatmul.mubr.f32.vlgmr.msra.gmra.mxu0 %v96_v10 }
  0x13   :  { %535 = vmatprep.subr.mxu1 %v556_v0  ;;  %540 = vmatprep.subr.mxu0 %v556_v0 }
  0x14   :  { %536 = vmatpush3.msra.mxu1 %v60_v5  ;;  %537 = vmatprep.mubr.msk.f32.mxu1 %vm557_vm1, %v556_v0 }
  0x15   :  { %541 = vmatpush3.msra.mxu0 %v136_v11  ;;  %538 = vmatmul.mubr.f32.vlgmr.msra.gmra.mxu1 %v97_v13 }
  0x16   :  { %542 = vmatprep.subr.mxu0 %v556_v0  ;;  %547 = vmatprep.subr.mxu1 %v556_v0 }
  0x17   :  { %543 = vmatpush3.msra.mxu0 %v143_v12  ;;  %544 = vmatprep.mubr.msk.f32.mxu0 %vm557_vm1, %v556_v0 }
  0x18   :  { %548 = vmatpush3.msra.mxu1 %v57_v4  ;;  %545 = vmatmul.mubr.f32.vlgmr.msra.gmra.mxu0 %v95_v7 }
  0x19   :  { %549 = vmatprep.subr.mxu1 %v556_v0  ;;  %551 = vmatprep.mubr.msk.f32.mxu1 %vm557_vm1, %v556_v0 }
  0x1a   :  { %550 = vmatpush3.msra.mxu1 %v60_v5 }
  0x1b   :  { %552 = vmatmul.mubr.f32.vlgmr.msra.gmra.mxu1 %v95_v7 }
  0xce   :  { %v101_v21 = vpop.f32.mrf.mxu0 }
  0xcf   :  { %v102_v22 = vadd.f32 %v493_v20, %v101_v21  ;;  %v182_v24 = vpop.f32.mrf.mxu1 }
  0xd0   :  { %v518_v23 = vpop.f32.mrf.mxu0 }
  0xd1   :  { %v183_v25 = vadd.f32 %v182_v24, %v102_v22  ;;  %v525_v26 = vpop.f32.mrf.mxu1 }
  0xd2   :  { %v258_v27 = vpop.f32.mrf.mxu0 }
  0xd3   :  { %v259_v28 = vadd.f32 %v258_v27, %v183_v25 }
  0xd4   :  { %v532_v29 = vpop.f32.mrf.mxu0 }
  0xd5   :  { %v333_v30 = vpop.f32.mrf.mxu1 }
  0xd6   :  { %v334_v31 = vadd.f32 %v333_v30, %v259_v28 }
  0xd7   :  { %v539_v32 = vpop.f32.mrf.mxu1 }
  0xd8   :  { %v410_v33 = vpop.f32.mrf.mxu0 }
  0xd9   :  { %v411_v34 = vadd.f32 %v410_v33, %v334_v31 }
  0xda   :  { %v546_v35 = vpop.f32.mrf.mxu0 }
  0xdb   :  { %v483_v36 = vpop.f32.mrf.mxu1 }
  0xdc   :  { %v484_v37 = vadd.f32 %v483_v36, %v411_v34 }
  0xdd   :  { %v553_v38 = vpop.f32.mrf.mxu1 }
  0xde   :  { %v487_v39 = vmax.f32 %v484_v37, 0.0 }
  0xe0   :  { %488 = vst [vmem:[%s602_s3] sm:$0xf] %v487_v39 }

</bundles_post_ra>
